<compile_context>
chip_gen: v7x
topology: tpu7x:2x2x1
jax: 0.10.0
libtpu: 0.0.40
codegen_flags: <defaults>
</compile_context>

<pallas_src>
import functools

import jax
import jax.numpy as jnp
from jax.experimental import pallas as pl
from jax.experimental.pallas import tpu as pltpu


# ------------------------- fused attention kernel ---------------------------

def _fused_attention_kernel(x_ref, wqkv_ref, wout_ref, bout_ref, o_ref, *,
                            heads, dim_head, scale):
    """One batch element per grid step; all heads processed together."""
    n = x_ref.shape[0]
    inner = heads * dim_head

    # ---- to_qkv: (N, dim) @ (dim, 3*inner), f32 accumulation on the MXU ----
    qkv = jnp.dot(x_ref[...], wqkv_ref[...], preferred_element_type=jnp.float32)

    # chunk(3, dim=-1): lane-aligned static slices when inner % 128 == 0.
    q = qkv[:, 0 * inner:1 * inner]
    k = qkv[:, 1 * inner:2 * inner]
    v = qkv[:, 2 * inner:3 * inner]

    # Fold the softmax scale into q (N*Dh multiplies instead of N*N).
    q = (q * scale).astype(x_ref.dtype).reshape(n, heads, dim_head)
    k = k.astype(x_ref.dtype).reshape(n, heads, dim_head)
    v = v.astype(x_ref.dtype).reshape(n, heads, dim_head)

    # ---- scores: contract Dh with K in its native layout, batched over heads.
    s = jnp.einsum("nhd,mhd->hnm", q, k, preferred_element_type=jnp.float32)

    # Numerically stable softmax in f32; divide via EUP approx reciprocal.
    s = s - jnp.max(s, axis=-1, keepdims=True)
    p = jnp.exp(s)
    denom = jnp.sum(p, axis=-1, keepdims=True)
    p = (p * pl.reciprocal(denom, approx=True)).astype(v.dtype)

    # ---- attn @ v, produced directly in 'n (h d)' layout.
    o = jnp.einsum("hnm,mhd->nhd", p, v, preferred_element_type=jnp.float32)
    o = o.reshape(n, inner).astype(x_ref.dtype)

    # ---- to_out: (N, inner) @ (inner, dim) + bias, f32 accumulation.
    out = jnp.dot(o, wout_ref[...], preferred_element_type=jnp.float32)
    out = out + bout_ref[...].astype(jnp.float32)
    o_ref[...] = out.astype(o_ref.dtype)


# ------------------------------- forward ------------------------------------

def attention_forward(x, params, *, heads, dim_head):
    """Forward pass matching the PyTorch Attention module (dropout p=0.0).

    x:      [B, N, dim] float32
    params: w_qkv [dim, 3*inner], w_out [inner, dim], b_out [dim]
            (weights stored transposed vs PyTorch: [in, out])
    """
    B, N, dim = x.shape
    inner = heads * dim_head
    cdt = jnp.bfloat16  # MXU-native compute dtype; f32 accumulation in-kernel

    xq = x.astype(cdt)
    wqkv = params["w_qkv"].astype(cdt)
    wout = params["w_out"].astype(cdt)
    bout = params["b_out"].reshape(1, dim)  # 2-D lane-aligned bias block

    scale = float(dim_head) ** -0.5
    kern = functools.partial(
        _fused_attention_kernel, heads=heads, dim_head=dim_head, scale=scale)

    return pl.pallas_call(
        kern,
        out_shape=jax.ShapeDtypeStruct((B, N, dim), jnp.float32),
        grid=(B,),
        in_specs=[
            # Per-batch activation tile streams through the pipeline.
            pl.BlockSpec((None, N, dim), lambda b: (b, 0, 0)),
            # Weights / bias: constant block index -> stay resident in VMEM.
            pl.BlockSpec((dim, 3 * inner), lambda b: (0, 0)),
            pl.BlockSpec((inner, dim), lambda b: (0, 0)),
            pl.BlockSpec((1, dim), lambda b: (0, 0)),
        ],
        out_specs=pl.BlockSpec((None, N, dim), lambda b: (b, 0, 0)),
        compiler_params=pltpu.CompilerParams(
            dimension_semantics=("parallel",)),
    )(xq, wqkv, wout, bout)


# ------------------------------ reference -----------------------------------

def reference_forward(x, params, *, heads, dim_head):
    B, N, dim = x.shape
    inner = heads * dim_head
    qkv = x @ params["w_qkv"]
    q, k, v = jnp.split(qkv, 3, axis=-1)

    def split_heads(t):
        return jnp.transpose(t.reshape(B, N, heads, dim_head), (0, 2, 1, 3))

    q, k, v = map(split_heads, (q, k, v))
    s = jnp.einsum("bhnd,bhmd->bhnm", q, k) * (float(dim_head) ** -0.5)
    p = jax.nn.softmax(s, axis=-1)
    o = jnp.einsum("bhnm,bhmd->bhnd", p, v)
    o = jnp.transpose(o, (0, 2, 1, 3)).reshape(B, N, inner)
    return o @ params["w_out"] + params["b_out"]


# --------------------------------- main --------------------------------------

if __name__ == "__main__":
    # Small, module-consistent shapes; inner = heads*dim_head = 128 (lane-dense).
    B, N, dim = 2, 8, 64
    heads, dim_head = 4, 32
    inner = heads * dim_head  # project_out=True since heads != 1

    key = jax.random.PRNGKey(0)
    kx, kq, kw, kb = jax.random.split(key, 4)

    x = jax.random.normal(kx, (B, N, dim), dtype=jnp.float32)

    params = {
        "w_qkv": 0.02 * jax.random.normal(kq, (dim, 3 * inner), dtype=jnp.float32),
        "w_out": 0.02 * jax.random.normal(kw, (inner, dim), dtype=jnp.float32),
        "b_out": 0.02 * jax.random.normal(kb, (dim,), dtype=jnp.float32),
    }

    fwd = jax.jit(functools.partial(attention_forward, heads=heads, dim_head=dim_head))
    out = jax.block_until_ready(fwd(x, params))

    ref = reference_forward(x, params, heads=heads, dim_head=dim_head)
    assert out.shape == (B, N, dim)
    # bf16 MXU inputs (f32 accumulation) -> looser tolerance than a pure-f32 path.
    assert jnp.allclose(out, ref, atol=2e-2, rtol=2e-2), float(jnp.max(jnp.abs(out - ref)))

    print("KERNEL_OK")
</pallas_src>

<mosaic_0001>
module attributes {stable_mosaic.version = 11 : i64} {
  func.func @_fused_attention_kernel(%arg0: i32, %arg1: memref<1x8x64xbf16, #tpu.memory_space<vmem>>, %arg2: memref<64x384xbf16, #tpu.memory_space<vmem>>, %arg3: memref<128x64xbf16, #tpu.memory_space<vmem>>, %arg4: memref<1x64xf32, #tpu.memory_space<vmem>>, %arg5: memref<1x8x64xf32, #tpu.memory_space<vmem>>) attributes {dimension_semantics = [#tpu.dimension_semantics<parallel>], iteration_bounds = array<i64: 2>, scalar_prefetch = 0 : i64, scratch_operands = 0 : i64, tpu.core_type = #tpu.core_type<tc>, window_params = [{transform_indices = @transform_0, window_bounds = array<i64: 1, 8, 64>}, {pipeline_mode = #tpu.pipeline_mode<synchronous>, transform_indices = @transform_1, window_bounds = array<i64: 64, 384>}, {pipeline_mode = #tpu.pipeline_mode<synchronous>, transform_indices = @transform_2, window_bounds = array<i64: 128, 64>}, {pipeline_mode = #tpu.pipeline_mode<synchronous>, transform_indices = @transform_3, window_bounds = array<i64: 1, 64>}, {transform_indices = @transform_4, window_bounds = array<i64: 1, 8, 64>}]} {
    %c0 = arith.constant 0 : index
    %c0_0 = arith.constant 0 : index
    %c0_1 = arith.constant 0 : index
    %0 = vector.load %arg1[%c0, %c0_0, %c0_1] : memref<1x8x64xbf16, #tpu.memory_space<vmem>>, vector<1x8x64xbf16>
    %1 = vector.shape_cast %0 : vector<1x8x64xbf16> to vector<8x64xbf16>
    %c0_2 = arith.constant 0 : index
    %c0_3 = arith.constant 0 : index
    %2 = vector.load %arg2[%c0_2, %c0_3] : memref<64x384xbf16, #tpu.memory_space<vmem>>, vector<64x384xbf16>
    %cst = arith.constant dense<0.000000e+00> : vector<8x384xf32>
    %3 = tpu.matmul %1, %2, %cst {dimension_numbers = #tpu.dot_dimension_numbers<[1], [0], [0], [1], [0, 0, 1, 1], [], []>} : vector<8x64xbf16>, vector<64x384xbf16>, vector<8x384xf32> -> vector<8x384xf32>
    %4 = vector.extract_strided_slice %3 {offsets = [0, 0], sizes = [8, 128], strides = [1, 1]} : vector<8x384xf32> to vector<8x128xf32>
    %5 = vector.extract_strided_slice %3 {offsets = [0, 128], sizes = [8, 128], strides = [1, 1]} : vector<8x384xf32> to vector<8x128xf32>
    %6 = vector.extract_strided_slice %3 {offsets = [0, 256], sizes = [8, 128], strides = [1, 1]} : vector<8x384xf32> to vector<8x128xf32>
    %cst_4 = arith.constant 0.176776692 : f32
    %7 = vector.broadcast %cst_4 : f32 to vector<8x128xf32>
    %8 = arith.mulf %4, %7 : vector<8x128xf32>
    %9 = arith.truncf %8 : vector<8x128xf32> to vector<8x128xbf16>
    %10 = vector.shape_cast %9 : vector<8x128xbf16> to vector<8x4x32xbf16>
    %11 = arith.truncf %5 : vector<8x128xf32> to vector<8x128xbf16>
    %12 = vector.shape_cast %11 : vector<8x128xbf16> to vector<8x4x32xbf16>
    %13 = arith.truncf %6 : vector<8x128xf32> to vector<8x128xbf16>
    %14 = vector.shape_cast %13 : vector<8x128xbf16> to vector<8x4x32xbf16>
    "tpu.trace_start"() <{level = 10 : i32, message = "nhd,mhd->hnm"}> : () -> ()
    %cst_5 = arith.constant dense<0.000000e+00> : vector<4x8x8xf32>
    %15 = tpu.matmul %10, %12, %cst_5 {dimension_numbers = #tpu.dot_dimension_numbers<[2], [2], [0], [0], [0, 1, 0, 0, 1, 0], [1], [1]>} : vector<8x4x32xbf16>, vector<8x4x32xbf16>, vector<4x8x8xf32> -> vector<4x8x8xf32>
    "tpu.trace_stop"() : () -> ()
    %cst_6 = arith.constant dense<0xFF800000> : vector<4x8xf32>
    %16 = vector.multi_reduction <maximumf>, %15, %cst_6 [2] : vector<4x8x8xf32> to vector<4x8xf32>
    %17 = vector.shape_cast %16 : vector<4x8xf32> to vector<4x8x1xf32>
    %18 = vector.broadcast %17 : vector<4x8x1xf32> to vector<4x8x8xf32>
    %19 = arith.subf %15, %18 : vector<4x8x8xf32>
    %20 = math.exp %19 : vector<4x8x8xf32>
    %cst_7 = arith.constant dense<0.000000e+00> : vector<4x8xf32>
    %21 = vector.multi_reduction <add>, %20, %cst_7 [2] : vector<4x8x8xf32> to vector<4x8xf32>
    %22 = vector.shape_cast %21 : vector<4x8xf32> to vector<4x8x1xf32>
    %23 = tpu.reciprocal %22 {approx = true} : vector<4x8x1xf32> -> vector<4x8x1xf32>
    %24 = vector.broadcast %23 : vector<4x8x1xf32> to vector<4x8x8xf32>
    %25 = arith.mulf %20, %24 : vector<4x8x8xf32>
    %26 = arith.truncf %25 : vector<4x8x8xf32> to vector<4x8x8xbf16>
    "tpu.trace_start"() <{level = 10 : i32, message = "hnm,mhd->nhd"}> : () -> ()
    %cst_8 = arith.constant dense<0.000000e+00> : vector<4x32x8xf32>
    %27 = tpu.matmul %14, %26, %cst_8 {dimension_numbers = #tpu.dot_dimension_numbers<[0], [2], [2], [1], [0, 1, 0, 2, 1, 1], [1], [0]>} : vector<8x4x32xbf16>, vector<4x8x8xbf16>, vector<4x32x8xf32> -> vector<4x32x8xf32>
    %28 = tpu.transpose %27, [2, 0, 1] : vector<4x32x8xf32> -> vector<8x4x32xf32>
    "tpu.trace_stop"() : () -> ()
    %29 = vector.shape_cast %28 : vector<8x4x32xf32> to vector<8x128xf32>
    %30 = arith.truncf %29 : vector<8x128xf32> to vector<8x128xbf16>
    %c0_9 = arith.constant 0 : index
    %c0_10 = arith.constant 0 : index
    %31 = vector.load %arg3[%c0_9, %c0_10] : memref<128x64xbf16, #tpu.memory_space<vmem>>, vector<128x64xbf16>
    %cst_11 = arith.constant dense<0.000000e+00> : vector<8x64xf32>
    %32 = tpu.matmul %30, %31, %cst_11 {dimension_numbers = #tpu.dot_dimension_numbers<[1], [0], [0], [1], [0, 0, 1, 1], [], []>} : vector<8x128xbf16>, vector<128x64xbf16>, vector<8x64xf32> -> vector<8x64xf32>
    %c0_12 = arith.constant 0 : index
    %c0_13 = arith.constant 0 : index
    %33 = vector.load %arg4[%c0_12, %c0_13] : memref<1x64xf32, #tpu.memory_space<vmem>>, vector<1x64xf32>
    %34 = vector.broadcast %33 : vector<1x64xf32> to vector<8x64xf32>
    %35 = arith.addf %32, %34 : vector<8x64xf32>
    %c0_14 = arith.constant 0 : index
    %c0_15 = arith.constant 0 : index
    %c0_16 = arith.constant 0 : index
    %36 = vector.load %arg5[%c0_14, %c0_15, %c0_16] : memref<1x8x64xf32, #tpu.memory_space<vmem>>, vector<1x8x64xf32>
    %37 = vector.shape_cast %36 : vector<1x8x64xf32> to vector<8x64xf32>
    %38 = vector.shape_cast %35 : vector<8x64xf32> to vector<1x8x64xf32>
    tpu.vector_store %arg5[%c0_14, %c0_15, %c0_16], %38 {strides = array<i32>} : memref<1x8x64xf32, #tpu.memory_space<vmem>>, vector<1x8x64xf32>,
    return
  }
  func.func @transform_0(%arg0: i32) -> (i32, i32, i32) {
    %c0_i32 = arith.constant 0 : i32
    %c0_i32_0 = arith.constant 0 : i32
    %c0_i32_1 = arith.constant 0 : i32
    return %arg0, %c0_i32, %c0_i32_0 : i32, i32, i32
  }
  func.func @transform_1(%arg0: i32) -> (i32, i32) {
    %c0_i32 = arith.constant 0 : i32
    %c0_i32_0 = arith.constant 0 : i32
    %c0_i32_1 = arith.constant 0 : i32
    return %c0_i32, %c0_i32_0 : i32, i32
  }
  func.func @transform_2(%arg0: i32) -> (i32, i32) {
    %c0_i32 = arith.constant 0 : i32
    %c0_i32_0 = arith.constant 0 : i32
    %c0_i32_1 = arith.constant 0 : i32
    return %c0_i32, %c0_i32_0 : i32, i32
  }
  func.func @transform_3(%arg0: i32) -> (i32, i32) {
    %c0_i32 = arith.constant 0 : i32
    %c0_i32_0 = arith.constant 0 : i32
    %c0_i32_1 = arith.constant 0 : i32
    return %c0_i32, %c0_i32_0 : i32, i32
  }
  func.func @transform_4(%arg0: i32) -> (i32, i32, i32) {
    %c0_i32 = arith.constant 0 : i32
    %c0_i32_0 = arith.constant 0 : i32
    %c0_i32_1 = arith.constant 0 : i32
    return %arg0, %c0_i32, %c0_i32_0 : i32, i32, i32
  }
}

</mosaic_0001>

<bundles_post_ra>
// kernel: attention_forward.1
= control target key start
LH: loop header
LB: loop body
LE: loop exit
PB: predicated region body
PF: predicated region fallthrough
CT: control target
= control target key end

     0   :  { %9 = vsyncpa [#allocation3], 0  ;;  %s2041_s0 = inlined_call_operand.vmem [shape: bf16[2,8,64], index: 0, kind: input, shape index: {}]   ;;  %s2042_s1 = inlined_call_operand.vmem [shape: bf16[64,384], index: 1, kind: input, shape index: {}]   ;;  %s2043_s2 = inlined_call_operand.vmem [shape: bf16[128,64], index: 2, kind: input, shape index: {}]   ;;  %s2044_s3 = inlined_call_operand.vmem [shape: f32[1,64], index: 3, kind: input, shape index: {}]   ;;  %s2045_s4 = inlined_call_operand.hbm [shape: f32[2,8,64], index: 4, kind: output, shape index: {}]  }
   0x1   :  { %11 = vsyncpa [#allocation3 + $0x1], 0  ;;  %s1801_s15 = smov 0   ;;  %s1803_s16 = smov 0  }
   0x2   :  { %s1805_s17 = smov 0   ;;  %s1807_s18 = smov 0  }
   0x3 LB: > { %s1822_s19 = sadd.s32 4294967295, %s1765_s18   ;;  %s1439_s20 = sadd.s32 4294967294, %s1765_s18   ;;  %s1765_s18 = sphi %s1807_s18, %s2051_s18   ;;  %s1761_s17 = sphi %s1805_s17, %s2050_s17   ;;  %s1757_s16 = sphi %s1803_s16, %s2049_s16   ;;  %s1753_s15 = sphi %s1801_s15, %s2048_s15  }
   0x4   : > { %s1826_s21 = sadd.s32 1, %s1765_s18   ;;  %s113_s22 = sadd.s32 1, %s1761_s17 }
   0x5   : > { %s110_s23 = ssub.s32 %s1765_s18, %s1826_s21  ;;  %p123_p0 = scmp.ne.s32.totalorder %s1761_s17, %s1757_s16 }
   0x6   : > { %p111_p1 = scmp.eq.s32.totalorder %s110_s23, 0  ;;  %p124_p2 = scmp.eq.s32.totalorder %s1822_s19, 1 }
   0x7   : > { %p129_p3 = scmp.ne.s32.totalorder %s1757_s16, %s1753_s15  ;;  %p130_p4 = scmp.eq.s32.totalorder %s1439_s20, 1 }
   0x8   : > { %s1837_s24 = scalar_select %p111_p1, %s1761_s17, %s113_s22  }
   0x9   : > { %p1839_p5 = por %p124_p2, %p123_p0  ;;  %p1843_p6 = por %p130_p4, %p129_p3 }
   0xa   : > { %p1442_p7 = scmp.ge.s32.totalorder %s1765_s18, 1  ;;  %p164_p8 = scmp.lt.s32.totalorder %s1765_s18, 3 }
   0xc   : > { %p165_p9 = pnand %p1442_p7, %p164_p8 }
   0xd   : > { %v1663_v0 = vld [vmem:[%s2042_s1 + $0x4] ss:$12 sps:$4 sm:$0xff] (!%p165_p9)   ;;  %p189_p10 = scmp.lt.s32.totalorder (!%p165_p9), %s1822_s19, 1  ;;  %v1665_v1 = vld [vmem:[%s2042_s1] ss:$12 sps:$4 sm:$0xff] (!%p165_p9)   ;;  %v1767_v2 = vmov (!%p165_p9), 0  }
   0xe   : > { %168 = sbr.rel (%p165_p9) target bundleno = 1812 (0x714), region = 36  ;;  %311 = vmatprep.mubr.bf16.mxu1 (!%p165_p9), %v1767_v2  ;;  %279 = vmatprep.subr.bf16.mxu1 (!%p165_p9), %v1663_v0  ;;  %v1666_v3 = vld [vmem:[%s2042_s1 + $0x1c] ss:$12 sps:$4 sm:$0xff] (!%p165_p9)   ;;  %v1668_v4 = vld [vmem:[%s2042_s1 + $0x18] ss:$12 sps:$4 sm:$0xff] (!%p165_p9)   ;;  %vm275_vm0 = vcmask (!%p165_p9), 523264  }
   0xf   : > { %280 = vmatpush1.bf16.msra.mxu1 (!%p165_p9), %v1665_v1  ;;  %v1669_v5 = vld [vmem:[%s2042_s1 + $0x34] ss:$12 sps:$4 sm:$0xff] (!%p165_p9)   ;;  %v1671_v6 = vld [vmem:[%s2042_s1 + $0x30] ss:$12 sps:$4 sm:$0xff] (!%p165_p9)   ;;  %v1672_v7 = vld [vmem:[%s2042_s1 + $0x4c] ss:$12 sps:$4 sm:$0xff] (!%p165_p9)  }
  0x10   : > { %281 = vmatprep.subr.bf16.mxu1 (!%p165_p9), %v1666_v3  ;;  %v1674_v8 = vld [vmem:[%s2042_s1 + $0x48] ss:$12 sps:$4 sm:$0xff] (!%p165_p9)   ;;  %v1768_v12 = vmov (!%p165_p9), 0.0   ;;  %s1769_s5 = smov (!%p165_p9), 32   ;;  %s1770_s6 = smov (!%p165_p9), 96   ;;  %vm1772_vm1 = vmmov (!%p165_p9), 0  }
  0x11   : > { %1536 = vmatprep.subr.bf16.mxu0 (!%p165_p9), %v1768_v12  ;;  %1540 = vmatprep.mubr.msk.bf16.mxu0 (!%p165_p9), %vm1772_vm1, %v1768_v12  ;;  %v1675_v18 = vld [vmem:[%s2042_s1 + $0x8] ss:$12 sps:$4 sm:$0xff] (!%p165_p9)   ;;  %v1676_v19 = vld [vmem:[%s2042_s1 + $0x20] ss:$12 sps:$4 sm:$0xff] (!%p165_p9)   ;;  %v1677_v20 = vld [vmem:[%s2042_s1 + $0x38] ss:$12 sps:$4 sm:$0xff] (!%p165_p9)  }
  0x12   : > { %v1678_v21 = vld [vmem:[%s2042_s1 + $0x50] ss:$12 sps:$4 sm:$0xff] (!%p165_p9)   ;;  %vm455_vm2 = vcmask (!%p165_p9), 261120   ;;  %vm628_vm3 = vcmask (!%p165_p9), 64512   ;;  %vm1251_vm4 = vcmask (!%p165_p9), 785408   ;;  %s186_s27 = sand.u32 (!%p165_p9), 1, %s1757_s16  }
  0x13   : > { %282 = vmatpush1.bf16.msra.mxu1 (!%p165_p9), %v1668_v4  ;;  %s1443_s28 = sshll.u32 (!%p165_p9), %s186_s27, 3  ;;  %s1775_s12 = smov (!%p165_p9), [#allocation2]  }
  0x14   : > { %283 = vmatprep.subr.bf16.mxu1 (!%p165_p9), %v1669_v5  ;;  %s1707_s13 = sshll.u32 (!%p165_p9), %s1775_s12, 4  ;;  %s1708_s13 = int_to_ptr.vmem [resolvable:$false] %s1707_s13 }
  0x15   : > { %s190_s7 = scalar_select %p189_p10, %s1822_s19, 1 }
  0x16   : > { %s1709_s14 = scalar_lea.vmem %s1708_s13, 256 }
  0x17   : > { %s1444_s22 = sshll.u32 %s190_s7, 2  ;;  %284 = vmatpush1.bf16.msra.mxu1 %v1671_v6  ;;  %s1771_s7 = smov 64  }
  0x18   : > { %285 = vmatprep.subr.bf16.mxu1 %v1672_v7  ;;  %s192_s30 = scalar_lea.vmem %s2041_s0, %s1444_s22 }
  0x19   : > { %v194_v9 = vld [vmem:[%s192_s30] sm:$0xf] }
  0x1b   : > { %286 = vmatpush1.bf16.msra.mxu1 %v1674_v8 }
  0x1c   : > { %1524 = vmatprep.subr.bf16.mxu1 %v1768_v12 }
  0x1e   : > { %1457 = vmatmul.mubr.msk.bf16.vlgmr.msra.gmra.mrb[0].mxu1 %vm275_vm0, %v194_v9 }
  0x1f   : > { %1532 = vmatprep.mubr.msk.bf16.mxu1 %vm1772_vm1, %v1768_v12  ;;  %1525 = vmatpush3.bf16.msra.mxu1 %v1675_v18 }
  0x20   : > { %1526 = vmatprep.subr.bf16.mxu1 %v1768_v12 }
  0x23   : > { %1527 = vmatpush3.bf16.msra.mxu1 %v1676_v19 }
  0x24   : > { %1528 = vmatprep.subr.bf16.mxu1 %v1768_v12 }
  0x27   : > { %1529 = vmatpush3.bf16.msra.mxu1 %v1677_v20 }
  0x28   : > { %1530 = vmatprep.subr.bf16.mxu1 %v1768_v12 }
  0x2b   : > { %1531 = vmatpush3.bf16.msra.mxu1 %v1678_v21 }
  0x2c   : > { %1544 = vmatprep.subr.bf16.mxu1 %v1768_v12 }
  0x2e   : > { %1533 = vmatmul.mubr.msk.bf16.vlgmr.msra.gmra.mrb[4].mxu1 %vm275_vm0, %v194_v9 }
  0x2f   : > { %1548 = vmatprep.mubr.msk.bf16.mxu1 %vm1772_vm1, %v1768_v12 }
  0xf1   : > { %v313_v10 = vpop.f32.mrb[0].mxu1 }
  0xf2   : > { %v315_v11 = vpop.f32.mrb[1].mxu1  ;;  %v360_v13 = vmul.f32 0.17677669, %v313_v10 }
  0xf3   : > { %v369_v14 = vpack.c.bf16 %v315_v11, %v315_v11  ;;  %v317_v15 = vpop.f32.mrb[2].mxu1 }
  0xf4   : > { %v318_v16 = vpop.f32.mrb[3].mxu1  ;;  %v361_v17 = vpack.c.bf16 %v360_v13, %v360_v13 }
  0xf5   : > { %377 = vrot.lane.b32.xlu1 %v369_v14, %s1769_s5  ;;  %371 = vrot.lane.b32.xlu0 %v369_v14, %s1770_s6 }
  0xf9   : > { %363 = vrot.lane.b32.xlu1 %v361_v17, %s1770_s6  ;;  %374 = vrot.lane.b32.xlu0 %v369_v14, %s1771_s7 }
  0xfd   : > { %367 = vrot.lane.b32.xlu1 %v361_v17, %s1769_s5 }
 0x101   : > { %v354_v36 = vpop.f32.mrb[4].mxu1 }
 0x102   : > { %v1534_v37 = vpop.f32.mrb[5].mxu1  ;;  %v380_v60 = vpack.c.bf16 %v354_v36, %v354_v36 }
 0x103   : > { %v357_v38 = vpop.f32.mrb[6].mxu1 }
 0x104   : > { %v1535_v39 = vpop.f32.mrb[7].mxu1 }
 0x117   : > { %391 = vxpose.xlu0.c.b16.start.end [1/1] (short) (narrow) %v369_v14, 32 }
 0x124   : > { %365 = vrot.lane.b32.xlu0 %v361_v17, %s1771_s7 }
 0x167   : > { %v372_v22 = vpop.permute.xlu0 %371  ;;  %v378_v24 = vpop.permute.xlu1 %377 }
 0x168   : > { %407 = vxpose.xlu1.c.b16.start.end [1/1] (short) (narrow) %v372_v22, 32 }
 0x16b   : > { %v375_v23 = vpop.permute.xlu0 %374  ;;  %v364_v27 = vpop.permute.xlu1 %363 }
 0x16c   : > { %423 = vxpose.xlu0.c.b16.start.end [1/1] (short) (narrow) %v375_v23, 32 }
 0x16f   : > { %v368_v28 = vpop.permute.xlu1 %367 }
 0x171   : > { %439 = vxpose.xlu0.c.b16.start.end [1/1] (short) (narrow) %v378_v24, 32 }
 0x17d   : > { %v399_v25 = vpop.trf.xlu0 }
 0x17e   : > { %1537 = vmatpush3.bf16.msra.mxu0 %v399_v25 }
 0x17f   : > { %1538 = vmatprep.subr.bf16.mxu0 %v1768_v12 }
 0x181   : > { %v400_v26 = vpop.trf.xlu0 }
 0x182   : > { %1539 = vmatpush3.bf16.msra.mxu0 %v400_v26 }
 0x183   : > { %1552 = vmatprep.subr.bf16.mxu0 %v1768_v12 }
 0x185   : > { %1541 = vmatmul.mubr.msk.bf16.vlgmr.msra.gmra.mrb[0].mxu0 %vm455_vm2, %v361_v17 }
 0x186   : > { %1556 = vmatprep.mubr.msk.bf16.mxu0 %vm1772_vm1, %v1768_v12 }
 0x196   : > { %v366_v29 = vpop.permute.xlu0 %365 }
 0x1ce   : > { %v415_v30 = vpop.trf.xlu1 }
 0x1cf   : > { %1545 = vmatpush3.bf16.msra.mxu1 %v415_v30 }
 0x1d0   : > { %1546 = vmatprep.subr.bf16.mxu1 %v1768_v12 }
 0x1d2   : > { %v416_v31 = vpop.trf.xlu1  ;;  %v431_v32 = vpop.trf.xlu0 }
 0x1d3   : > { %1547 = vmatpush3.bf16.msra.mxu1 %v416_v31  ;;  %1553 = vmatpush3.bf16.msra.mxu0 %v431_v32 }
 0x1d4   : > { %1554 = vmatprep.subr.bf16.mxu0 %v1768_v12  ;;  %1560 = vmatprep.subr.bf16.mxu1 %v1768_v12 }
 0x1d6   : > { %1549 = vmatmul.mubr.msk.bf16.vlgmr.msra.gmra.mrb[8].mxu1 %vm455_vm2, %v364_v27  ;;  %v432_v33 = vpop.trf.xlu0 }
 0x1d7   : > { %1555 = vmatpush3.bf16.msra.mxu0 %v432_v33  ;;  %1564 = vmatprep.mubr.msk.bf16.mxu1 %vm1772_vm1, %v1768_v12 }
 0x1da   : > { %1557 = vmatmul.mubr.msk.bf16.vlgmr.msra.gmra.mrb[4].mxu0 %vm455_vm2, %v366_v29  ;;  %v447_v34 = vpop.trf.xlu0 }
 0x1db   : > { %1561 = vmatpush3.bf16.msra.mxu1 %v447_v34 }
 0x1dc   : > { %1562 = vmatprep.subr.bf16.mxu1 %v1768_v12 }
 0x1de   : > { %v448_v35 = vpop.trf.xlu0 }
 0x1df   : > { %1563 = vmatpush3.bf16.msra.mxu1 %v448_v35 }
 0x1e2   : > { %1565 = vmatmul.mubr.msk.bf16.vlgmr.msra.gmra.mrb[12].mxu1 %vm455_vm2, %v368_v28 }
 0x258   : > { %v493_v40 = vpop.f32.mrb[0].mxu0 }
 0x259   : > { %v1542_v41 = vpop.f32.mrb[1].mxu0  ;;  %v629_v42 = vsel %vm628_vm3, %v493_v40, -inf }
 0x25a   : > { %630 = vmax.xlane.f32.xlu1 %v629_v42  ;;  %v496_v43 = vpop.f32.mrb[2].mxu0 }
 0x25b   : > { %v1543_v44 = vpop.f32.mrb[3].mxu0 }
 0x2a9   : > { %v536_v45 = vpop.f32.mrb[8].mxu1 }
 0x2aa   : > { %v1550_v46 = vpop.f32.mrb[9].mxu1  ;;  %v632_v47 = vsel %vm628_vm3, %v536_v45, -inf }
 0x2ab   : > { %633 = vmax.xlane.f32.xlu0 %v632_v47  ;;  %v539_v48 = vpop.f32.mrb[10].mxu1 }
 0x2ac   : > { %v1551_v49 = vpop.f32.mrb[11].mxu1 }
 0x2ad   : > { %v579_v50 = vpop.f32.mrb[4].mxu0 }
 0x2ae   : > { %v1558_v51 = vpop.f32.mrb[5].mxu0  ;;  %v635_v52 = vsel %vm628_vm3, %v579_v50, -inf }
 0x2af   : > { %636 = vmax.xlane.f32.xlu1 %v635_v52  ;;  %v582_v53 = vpop.f32.mrb[6].mxu0 }
 0x2b0   : > { %v1559_v54 = vpop.f32.mrb[7].mxu0 }
 0x2b5   : > { %v622_v55 = vpop.f32.mrb[12].mxu1 }
 0x2b6   : > { %v1566_v56 = vpop.f32.mrb[13].mxu1  ;;  %v638_v57 = vsel %vm628_vm3, %v622_v55, -inf }
 0x2b7   : > { %639 = vmax.xlane.f32.xlu1 %v638_v57  ;;  %v625_v58 = vpop.f32.mrb[14].mxu1 }
 0x2b8   : > { %v1567_v59 = vpop.f32.mrb[15].mxu1 }
 0x2c1   : > { %382 = vrot.lane.b32.xlu0 %v380_v60, %s1770_s6 }
 0x2c5   : > { %388 = vrot.lane.b32.xlu0 %v380_v60, %s1769_s5 }
 0x2e7   : > { %v631_v61 = vpop.xlane.xlu1 %630 }
 0x2e8   : > { %v641_v62 = vsub.f32 %v493_v40, %v631_v61 }
 0x2ea   : > { %v645_v63 = vmul.f32 1.442695, %v641_v62 }
 0x2ec   : > { %1687 = vpow2.f32 %v645_v63 }
 0x2f6   : > { %v1688_v0 = vpop.eup %1687 }
 0x2f7   : > { %v653_v1 = vsel %vm628_vm3, %v1688_v0, 0.0 }
 0x2f8   : > { %654 = vadd.xlane.f32.xlu1 %v653_v1  ;;  %v1679_v1 = vld [vmem:[%s2043_s2] sm:$0xff]  }
 0x338   : > { %v634_v2 = vpop.xlane.xlu0 %633 }
 0x339   : > { %v642_v3 = vsub.f32 %v536_v45, %v634_v2  ;;  %v1680_v2 = vld [vmem:[%s2043_s2 + $0x8] sm:$0xff]  }
 0x33b   : > { %v647_v4 = vmul.f32 1.442695, %v642_v3  ;;  %v1681_v3 = vld [vmem:[%s2043_s2 + $0x10] sm:$0xff]  }
 0x33c   : > { %v637_v5 = vpop.xlane.xlu1 %636  ;;  %v383_v23 = vpop.permute.xlu0 %382 }
 0x33d   : > { %1689 = vpow2.f32 %v647_v4  ;;  %v643_v6 = vsub.f32 %v579_v50, %v637_v5  ;;  %v1682_v4 = vld [vmem:[%s2043_s2 + $0x18] sm:$0xff]   ;;  %v1683_v5 = vld [vmem:[%s2043_s2 + $0x20] sm:$0xff]  }
 0x33f   : > { %v649_v7 = vmul.f32 1.442695, %v643_v6  ;;  %v1684_v6 = vld [vmem:[%s2043_s2 + $0x28] sm:$0xff]  }
 0x340   : > { %v389_v24 = vpop.permute.xlu0 %388 }
 0x341   : > { %1691 = vpow2.f32 %v649_v7 }
 0x344   : > { %v640_v13 = vpop.xlane.xlu1 %639 }
 0x345   : > { %v644_v14 = vsub.f32 %v622_v55, %v640_v13  ;;  %v1774_v13 = vmov 1934713408  }
 0x347   : > { %v1690_v8 = vpop.eup %1689  ;;  %v651_v15 = vmul.f32 1.442695, %v644_v14  ;;  %v1136_v14 = vunpack.c.l.s4 %v1774_v13 }
 0x348   : > { %v656_v9 = vsel %vm628_vm3, %v1690_v8, 0.0 }
 0x349   : > { %657 = vadd.xlane.f32.xlu1 %v656_v9  ;;  %1693 = vpow2.f32 %v651_v15 }
 0x34b   : > { %v1692_v10 = vpop.eup %1691 }
 0x34c   : > { %v659_v11 = vsel %vm628_vm3, %v1692_v10, 0.0 }
 0x34d   : > { %660 = vadd.xlane.f32.xlu0 %v659_v11 }
 0x353   : > { %v1694_v16 = vpop.eup %1693 }
 0x354   : > { %v662_v17 = vsel %vm628_vm3, %v1694_v16, 0.0 }
 0x35a   : > { %385 = vrot.lane.b32.xlu1 %v380_v60, %s1771_s7 }
 0x37a   : > { %677 = vxpose.xlu0.c.b16.start.end [1/1] (short) (narrow) %v380_v60, 32 }
 0x37e   : > { %663 = vadd.xlane.f32.xlu1 %v662_v17 }
 0x385   : > { %v655_v18 = vpop.xlane.xlu1 %654 }
 0x386   : > { %1695 = vrcp.f32 %v655_v18  ;;  %v1137_v18 = vunpack.c.0.s8 %v1136_v14 }
 0x390   : > { %v1696_v19 = vpop.eup %1695 }
 0x391   : > { %v669_v20 = vmul.f32 %v1696_v19, %v1688_v0 }
 0x393   : > { %v673_v21 = vpack.c.bf16 %v669_v20, %v669_v20 }
 0x395   : > { %1612 = vmatprep.subr.msk.bf16.mxu0 %vm628_vm3, %v673_v21  ;;  %v748_v22 = vsel %vm628_vm3, %v673_v21, 0 }
 0x396   : > { %1569 = vmatpush3.bf16.xpose.msra.mxu0 %v748_v22 }
 0x3ab   : > { %693 = vxpose.xlu1.c.b16.start.end [1/1] (short) (narrow) %v383_v23, 32 }
 0x3d6   : > { %v658_v25 = vpop.xlane.xlu1 %657 }
 0x3d7   : > { %1697 = vrcp.f32 %v658_v25 }
 0x3da   : > { %v661_v26 = vpop.xlane.xlu0 %660  ;;  %v386_v27 = vpop.permute.xlu1 %385 }
 0x3db   : > { %1699 = vrcp.f32 %v661_v26  ;;  %709 = vxpose.xlu0.c.b16.start.end [1/1] (short) (narrow) %v386_v27, 32 }
 0x3e0   : > { %725 = vxpose.xlu0.c.b16.start.end [1/1] (short) (narrow) %v389_v24, 32  ;;  %v685_v28 = vpop.trf.xlu0 }
 0x3e1   : > { %v1698_v29 = vpop.eup %1697  ;;  %1570 = vmatprep.mubr.msk.bf16.mxu0 %vm628_vm3, %v685_v28 }
 0x3e2   : > { %v670_v30 = vmul.f32 %v1698_v29, %v1690_v8  ;;  %v1773_v8 = vmov 1983009808  }
 0x3e3   : > { %v1104_v9 = vunpack.c.l.s4 %v1773_v8 }
 0x3e4   : > { %v674_v31 = vpack.c.bf16 %v670_v30, %v670_v30  ;;  %v686_v32 = vpop.trf.xlu0  ;;  %v1685_v30 = vld [vmem:[%s2043_s2 + $0x30] sm:$0xff]  }
 0x3e5   : > { %v1700_v33 = vpop.eup %1699  ;;  %1571 = vmatmul.mubr.msk.bf16.vlgmr.msra.gmra.mrb[8].mxu0 %vm628_vm3, %v686_v32  ;;  %v1105_v15 = vunpack.c.0.s8 %v1104_v9 }
 0x3e6   : > { %1613 = vmatprep.subr.msk.bf16.mxu1 %vm628_vm3, %v674_v31  ;;  %v806_v34 = vsel %vm628_vm3, %v674_v31, 0  ;;  %v671_v35 = vmul.f32 %v1700_v33, %v1692_v10  ;;  %v1106_v10 = vlaneseq }
 0x3e7   : > { %1575 = vmatpush3.bf16.xpose.msra.mxu1 %v806_v34 }
 0x3e8   : > { %v675_v36 = vpack.c.bf16 %v671_v35, %v671_v35 }
 0x3ea   : > { %1614 = vmatprep.subr.msk.bf16.mxu0 %vm628_vm3, %v675_v36  ;;  %v864_v37 = vsel %vm628_vm3, %v675_v36, 0 }
 0x3eb   : > { %1581 = vmatpush3.bf16.xpose.msra.mxu0 %v864_v37 }
 0x3ec   : > { %1592 = vmatprep.subr.bf16.mxu0 %v1768_v12 }
 0x40b   : > { %v664_v38 = vpop.xlane.xlu1 %663 }
 0x40c   : > { %1701 = vrcp.f32 %v664_v38 }
 0x411   : > { %v701_v39 = vpop.trf.xlu1 }
 0x412   : > { %1576 = vmatprep.mubr.msk.bf16.mxu1 %vm628_vm3, %v701_v39  ;;  %v1686_v39 = vld [vmem:[%s2043_s2 + $0x38] sm:$0xff]  }
 0x415   : > { %v702_v40 = vpop.trf.xlu1 }
 0x416   : > { %v1702_v41 = vpop.eup %1701  ;;  %1577 = vmatmul.mubr.msk.bf16.vlgmr.msra.gmra.mrb[16].mxu1 %vm628_vm3, %v702_v40 }
 0x417   : > { %v672_v42 = vmul.f32 %v1702_v41, %v1694_v16  ;;  %v1107_v16 = vshrl.u32 %v1106_v10, 7 }
 0x419   : > { %v676_v43 = vpack.c.bf16 %v672_v42, %v672_v42  ;;  %v1108_v19 = vsub.s32 %v1105_v15, %v1107_v16  ;;  %v1140_v25 = vsub.s32 %v1137_v18, %v1107_v16 }
 0x41b   : > { %1615 = vmatprep.subr.msk.bf16.mxu1 %vm628_vm3, %v676_v43  ;;  %v922_v44 = vsel %vm628_vm3, %v676_v43, 0 }
 0x41c   : > { %1587 = vmatpush3.bf16.xpose.msra.mxu1 %v922_v44 }
 0x441   : > { %v717_v45 = vpop.trf.xlu0 }
 0x442   : > { %1582 = vmatprep.mubr.msk.bf16.mxu0 %vm628_vm3, %v717_v45 }
 0x445   : > { %v718_v46 = vpop.trf.xlu0 }
 0x446   : > { %1583 = vmatmul.mubr.msk.bf16.vlgmr.msra.gmra.mrb[12].mxu0 %vm628_vm3, %v718_v46 }
 0x447   : > { %1608 = vmatprep.mubr.msk.bf16.mxu0 %vm1772_vm1, %v1768_v12  ;;  %1593 = vmatpush3.bf16.msra.mxu0 %v1679_v1 }
 0x448   : > { %1594 = vmatprep.subr.bf16.mxu0 %v1768_v12 }
 0x449   : > { %v733_v47 = vpop.trf.xlu0 }
 0x44a   : > { %1588 = vmatprep.mubr.msk.bf16.mxu1 %vm628_vm3, %v733_v47 }
 0x44b   : > { %1595 = vmatpush3.bf16.msra.mxu0 %v1680_v2  ;;  %v1473_v2 = vld [vmem:[%s2044_s3] ss:$0 sm:$0xff] }
 0x44c   : > { %1596 = vmatprep.subr.bf16.mxu0 %v1768_v12 }
 0x44d   : > { %v734_v48 = vpop.trf.xlu0 }
 0x44e   : > { %1589 = vmatmul.mubr.msk.bf16.vlgmr.msra.gmra.mrb[20].mxu1 %vm628_vm3, %v734_v48 }
 0x44f   : > { %1597 = vmatpush3.bf16.msra.mxu0 %v1681_v3 }
 0x450   : > { %1598 = vmatprep.subr.bf16.mxu0 %v1768_v12 }
 0x453   : > { %1599 = vmatpush3.bf16.msra.mxu0 %v1682_v4 }
 0x454   : > { %1600 = vmatprep.subr.bf16.mxu0 %v1768_v12 }
 0x457   : > { %1601 = vmatpush3.bf16.msra.mxu0 %v1683_v5 }
 0x458   : > { %1602 = vmatprep.subr.bf16.mxu0 %v1768_v12 }
 0x45b   : > { %1603 = vmatpush3.bf16.msra.mxu0 %v1684_v6 }
 0x45c   : > { %1604 = vmatprep.subr.bf16.mxu0 %v1768_v12 }
 0x45f   : > { %1605 = vmatpush3.bf16.msra.mxu0 %v1685_v30 }
 0x460   : > { %1606 = vmatprep.subr.bf16.mxu0 %v1768_v12 }
 0x463   : > { %1607 = vmatpush3.bf16.msra.mxu0 %v1686_v39 }
 0x4b8   : > { %v1572_v49 = vpop.f32.mrb[8].mxu0 }
 0x4b9   : > { %v784_v50 = vpop.f32.mrb[9].mxu0 }
 0x4ba   : > { %973 = vxpose.xlu1.b32.start [1/4] (short) (narrow) %v784_v50, 8  ;;  %v1573_v51 = vpop.f32.mrb[10].mxu0 }
 0x4bb   : > { %v787_v52 = vpop.f32.mrb[11].mxu0 }
 0x4be   : > { %974 = vxpose.xlu1.b32.cont [2/4] (short) (narrow) %v787_v52, 8 }
 0x4c2   : > { %975 = vxpose.xlu1.b32.cont [3/4] (short) (narrow) %v1572_v49, 8 }
 0x4c6   : > { %976 = vxpose.xlu1.b32.end [4/4] (short) (narrow) %v1573_v51, 8 }
 0x4e9   : > { %v1578_v53 = vpop.f32.mrb[16].mxu1 }
 0x4ea   : > { %v842_v54 = vpop.f32.mrb[17].mxu1 }
 0x4eb   : > { %1005 = vxpose.xlu0.b32.start [1/4] (short) (narrow) %v842_v54, 8  ;;  %v1579_v55 = vpop.f32.mrb[18].mxu1 }
 0x4ec   : > { %v845_v56 = vpop.f32.mrb[19].mxu1 }
 0x4ef   : > { %1006 = vxpose.xlu0.b32.cont [2/4] (short) (narrow) %v845_v56, 8 }
 0x4f3   : > { %1007 = vxpose.xlu0.b32.cont [3/4] (short) (narrow) %v1578_v53, 8 }
 0x4f7   : > { %1008 = vxpose.xlu0.b32.end [4/4] (short) (narrow) %v1579_v55, 8 }
 0x519   : > { %v1584_v57 = vpop.f32.mrb[12].mxu0 }
 0x51a   : > { %v900_v58 = vpop.f32.mrb[13].mxu0 }
 0x51b   : > { %v1585_v59 = vpop.f32.mrb[14].mxu0  ;;  %1037 = vxpose.xlu0.b32.start [1/4] (short) (narrow) %v900_v58, 8 }
 0x51c   : > { %v903_v60 = vpop.f32.mrb[15].mxu0 }
 0x51f   : > { %1038 = vxpose.xlu0.b32.cont [2/4] (short) (narrow) %v903_v60, 8 }
 0x521   : > { %v1590_v61 = vpop.f32.mrb[20].mxu1 }
 0x522   : > { %v958_v62 = vpop.f32.mrb[21].mxu1 }
 0x523   : > { %1039 = vxpose.xlu0.b32.cont [3/4] (short) (narrow) %v1584_v57, 8  ;;  %1069 = vxpose.xlu1.b32.start [1/4] (short) (narrow) %v958_v62, 8  ;;  %v1591_v63 = vpop.f32.mrb[22].mxu1 }
 0x524   : > { %v961_v0 = vpop.f32.mrb[23].mxu1 }
 0x527   : > { %1040 = vxpose.xlu0.b32.end [4/4] (short) (narrow) %v1585_v59, 8  ;;  %1070 = vxpose.xlu1.b32.cont [2/4] (short) (narrow) %v961_v0, 8 }
 0x52b   : > { %1071 = vxpose.xlu1.b32.cont [3/4] (short) (narrow) %v1590_v61, 8 }
 0x52f   : > { %1072 = vxpose.xlu1.b32.end [4/4] (short) (narrow) %v1591_v63, 8 }
 0x53a   : > { %v989_v11 = vpop.trf.xlu1 }
 0x56b   : > { %v1021_v7 = vpop.trf.xlu0 }
 0x59b   : > { %v1053_v17 = vpop.trf.xlu0 }
 0x59c   : > { %v1101_v20 = vcombine.low %v989_v11, %v1053_v17  ;;  %v1102_v21 = vcombine.high %v989_v11, %v1053_v17 }
 0x59e   : > { %v1109_v26 = vrot.slane %v1101_v20, %v1108_v19  ;;  %v1116_v27 = vrot.slane %v1102_v21, %v1108_v19 }
 0x5a3   : > { %v1085_v22 = vpop.trf.xlu1 }
 0x5a4   : > { %v1117_v23 = vcombine.low %v1021_v7, %v1085_v22  ;;  %v1118_v24 = vcombine.high %v1021_v7, %v1085_v22 }
 0x5a6   : > { %v1125_v28 = vrot.slane %v1117_v23, %v1108_v19  ;;  %v1132_v29 = vrot.slane %v1118_v24, %v1108_v19 }
 0x5a8   : > { %v1133_v31 = vcombine.low %v1109_v26, %v1125_v28  ;;  %v1134_v32 = vcombine.high %v1109_v26, %v1125_v28  ;;  %v1149_v33 = vcombine.low %v1116_v27, %v1132_v29  ;;  %v1150_v34 = vcombine.high %v1116_v27, %v1132_v29 }
 0x5aa   : > { %v1141_v35 = vrot.slane %v1133_v31, %v1140_v25  ;;  %v1148_v36 = vrot.slane %v1134_v32, %v1140_v25  ;;  %v1157_v37 = vrot.slane %v1149_v33, %v1140_v25  ;;  %v1164_v38 = vrot.slane %v1150_v34, %v1140_v25 }
 0x5ac   : > { %v1169_v40 = vcombine.low %v1141_v35, %v1148_v36  ;;  %v1471_v41 = vcombine.high %v1141_v35, %v1148_v36  ;;  %v1185_v42 = vcombine.low %v1157_v37, %v1164_v38  ;;  %v1472_v43 = vcombine.high %v1157_v37, %v1164_v38 }
 0x5ae   : > { %v1176_v44 = vrot.slane %v1169_v40, %v1108_v19  ;;  %v1184_v45 = vrot.slane %v1471_v41, %v1108_v19  ;;  %v1192_v46 = vrot.slane %v1185_v42, %v1108_v19  ;;  %v1200_v47 = vrot.slane %v1472_v43, %v1108_v19 }
 0x5b0   : > { %v1202_v48 = vcombine.high %v1176_v44, %v1184_v45  ;;  %v1218_v49 = vcombine.high %v1192_v46, %v1200_v47  ;;  %v1201_v50 = vcombine.low %v1176_v44, %v1184_v45  ;;  %v1217_v51 = vcombine.low %v1192_v46, %v1200_v47 }
 0x5b2   : > { %v1216_v52 = vrot.slane %v1202_v48, %v1140_v25  ;;  %v1232_v53 = vrot.slane %v1218_v49, %v1140_v25  ;;  %v1209_v12 = vrot.slane %v1201_v50, %v1140_v25  ;;  %v1225_v54 = vrot.slane %v1217_v51, %v1140_v25 }
 0x5b4   : > { %v1235_v55 = vcombine.low %v1216_v52, %v1232_v53  ;;  %v1234_v56 = vcombine.high %v1209_v12, %v1225_v54  ;;  %v1233_v57 = vcombine.low %v1209_v12, %v1225_v54  ;;  %v1236_v58 = vcombine.high %v1216_v52, %v1232_v53 }
 0x5b6   : > { %1242 = vrot.lane.b32.xlu1 %v1235_v55, %s1771_s7  ;;  %1238 = vrot.lane.b32.xlu0 %v1234_v56, %s1769_s5  ;;  %s1483_s5 = sshll.u32 %s1822_s19, 7  ;;  %s1367_s19 = scalar_lea.sflag [#allocation3], %s186_s27 }
 0x5b7   : > { %s1998_s10 = scalar_lea.hbm %s2045_s4, %s1483_s5 }
 0x5ba   : > { %1246 = vrot.lane.b32.xlu1 %v1236_v58, %s1770_s6  ;;  %s188_s6 = scalar_lea.vmem [#allocation2], %s1443_s28 }
 0x5bb   : > { %s1380_s30 = sshll.u32 %s188_s6, 4  ;;  %s2000_s30 = int_to_ptr.vmem [resolvable:$true] %s1380_s30 }
 0x5bc   : > { %s1703_s11 = scalar_lea.vmem %s2000_s30, 128  ;;  %p1710_p0 = scmp.lt.s32.totalorder %s2000_s30, %s1708_s13 }
 0x5bd   : > { %p1704_p11 = scmp.ne.s32.totalorder %s2000_s30, %s1703_s11  ;;  %p1711_p1 = scmp.lt.s32.totalorder %s1709_s14, %s1703_s11 }
 0x5bf   : > { %p1705_p12 = pnand %p1704_p11, %p1839_p5  ;;  %p1712_p2 = por %p1711_p1, %p1710_p0 }
 0x5c1   : > { %p1706_p13 = pneg %p1705_p12 }
 0x5c3   : > { %p1713_p3 = pnand %p1712_p2, %p1706_p13 }
 0x628   : > { %v1243_v59 = vpop.permute.xlu1 %1242  ;;  %v1239_v60 = vpop.permute.xlu0 %1238 }
 0x629   : > { %v1249_v61 = vsel %vm455_vm2, %v1233_v57, %v1239_v60 }
 0x62a   : > { %v1250_v63 = vsel %vm275_vm0, %v1249_v61, %v1243_v59 }
 0x62c   : > { %v1247_v62 = vpop.permute.xlu1 %1246 }
 0x62d   : > { %v1252_v0 = vsel %vm1251_vm4, %v1250_v63, %v1247_v62 }
 0x62e   : > { %v1253_v1 = vpack.c.bf16 %v1252_v0, %v1252_v0 }
 0x630   : > { %1609 = vmatmul.mubr.bf16.vlgmr.msra.gmra.mrb[16].mxu0 %v1253_v1 }
 0x703   : > { %v1359_v3 = vpop.f32.mrb[16].mxu0 }
 0x704   : > { %v1360_v4 = vadd.f32 %v1473_v2, %v1359_v3  ;;  %v1610_v5 = vpop.f32.mrb[17].mxu0 }
 0x705   : > { %v1362_v6 = vpop.f32.mrb[18].mxu0 }
 0x706   : > { %v1611_v7 = vpop.f32.mrb[19].mxu0  ;;  %1365 = vst.msk [vmem:[%s188_s6] sm:$0xff] %vm275_vm0, %v1360_v4 }
 0x707   : > { %1716 = shalt.err (!%p1713_p3)
}
 0x708   : > { %s1717_s20 = scalar_lea.hbm %s1998_s10, 128  ;;  %s1721_s27 = scalar_lea.hbm %s2045_s4, 256 }
 0x709   : > { %p1718_p4 = scmp.ne.s32.totalorder %s1998_s10, %s1717_s20  ;;  %p1722_p9 = scmp.lt.u32.totalorder %s1998_s10, %s2045_s4 }
 0x70a   : > { %p1723_p10 = scmp.lt.u32.totalorder %s1721_s27, %s1717_s20  ;;  %p1725_p12 = scmp.lt.u32.totalorder %s1717_s20, %s1998_s10 }
 0x70b   : > { %p1719_p7 = pnand %p1718_p4, %p1839_p5 }
 0x70c   : > { %p1724_p11 = por %p1723_p10, %p1722_p9 }
 0x70d   : > { %p1720_p8 = pneg %p1719_p7 }
 0x70e   : > { %p1726_p13 = por %p1725_p12, %p1724_p11 }
 0x710   : > { %p1727_p0 = pnand %p1726_p13, %p1720_p8 }
 0x712   : > { %1730 = shalt.err (!%p1727_p0)
}
 0x713   : > { %1616 = dma.vmem_to_hbm [thread:$0]  (%p1839_p5), %s2000_s30, 128, %s1998_s10, %s1367_s19  }
 0x714 PF: > { %p1622_p1 = scmp.ge.s32.totalorder %s1765_s18, 2  ;;  %s1392_s29 = sand.u32 1, %s1753_s15  }
 0x715   : > { %s1393_s5 = scalar_lea.sflag [#allocation3], %s1392_s29 }
 0x716   : > { %p1619_p2 = pnand %p1622_p1, %p1843_p6 }
 0x718   : > { %1748 = dma.done.wait (!%p1619_p2), %s1393_s5, 128  }
 0x719   : > { %1750 = vsyncadd (!%p1619_p2), %s1393_s5, 4294967168  ;;  %p14_p3 = scmp.ge.s32.totalorder %s1826_s21, 4   ;;  %s2048_s15 = smov %s1757_s16 }
 0x71a   : > { %s2049_s16 = smov %s1761_s17  ;;  %s2050_s17 = smov %s1837_s24 }
 0x71b   : > { %s2051_s18 = smov %s1826_s21  ;;  %16 = sbr.rel (!%p14_p3) target bundleno = 3 (0x3), region = 71 }
 0x722   :  { %1398 = vsyncpa [#allocation3], 1 }
 0x723   :  { %1400 = vsyncpa [#allocation3 + $0x1], 1 }

</bundles_post_ra>
